<compile_context>
chip_gen: v7x
topology: tpu7x:2x2x1
jax: 0.10.0
libtpu: 0.0.40
codegen_flags: <defaults>
</compile_context>

<pallas_src>
import functools
import math

import jax
import jax.numpy as jnp
from jax.experimental import pallas as pl
from jax.experimental.pallas import tpu as pltpu


def _from_rgb_kernel(x_ref, w_ref, b_ref, o_ref, *, c_out, neg_slope, alpha):
    # x_ref: (1, Cin, tm)   pixel tile, channels on sublanes, pixels on lanes
    # w_ref: (C_out, Cin)   scaled conv weight (resident)
    # b_ref: (C_out, 1)     bias (f32, resident)
    # o_ref: (1, C_out, tm) channels-major output tile (NCHW-native)
    x = x_ref[0]                      # (Cin, tm)
    w = w_ref[...]                    # (C_out, Cin)

    # 1x1 conv == channel matmul; MXU with f32 accumulation.
    y = jnp.dot(w, x, preferred_element_type=jnp.float32)      # (C_out, tm)
    y = y + b_ref[...].astype(jnp.float32)                      # lane-broadcast add

    # LeakyReLU(0.2) as a single max (valid for 0 < slope < 1).
    y = jnp.maximum(y, neg_slope * y)

    # PixelwiseNorm: x / sqrt(mean(x^2 over channels) + alpha).
    # Channel axis is the sublane axis -> XLU reduction (free slot).
    ssq = jnp.sum(y * y, axis=0, keepdims=True)                 # (1, tm)
    inv = jax.lax.rsqrt(ssq * (1.0 / c_out) + alpha)            # EUP

    o_ref[0] = (y * inv).astype(o_ref.dtype)


def from_rgb_forward(x, weight, bias, *, neg_slope=0.2, alpha=1e-8, tm=1024):
    """Forward pass of `from_rgb` (use_eql=True).

    x:      (B, 3, H, W)            input image (NCHW, like PyTorch)
    weight: (C_out, 3, 1, 1)        _equalized_conv2d weight (unscaled, as stored)
    bias:   (C_out,)                conv bias
    returns (B, C_out, H, W)
    """
    B, Cin, H, W = x.shape
    C_out = weight.shape[0]
    fan_in = Cin * weight.shape[2] * weight.shape[3]
    scale = math.sqrt(2.0) / math.sqrt(fan_in)          # equalized-lr scale

    M = H * W

    # Pixel tile: last block dim must be a multiple of 128 (lane width); clamp for
    # small images so we don't over-pad.
    tm = max(128, (int(tm) // 128) * 128)
    tm = min(tm, ((M + 127) // 128) * 128)
    M_pad = ((M + tm - 1) // tm) * tm

    # v7x has 2 TensorCores; keep the parallel grid length >= 2 when possible.
    if B * (M_pad // tm) < 2 and M_pad > 128:
        tm = max(128, ((M_pad // 2) // 128) * 128)
        M_pad = ((M + tm - 1) // tm) * tm

    # NCHW -> (B, Cin, M): pure reshape, no transpose.  Pad pixels only if needed
    # (padded pixels see zero input -> bias only -> finite after pixel-norm; sliced off).
    x_rows = x.reshape(B, Cin, M)
    if M_pad != M:
        x_rows = jnp.pad(x_rows, ((0, 0), (0, 0), (0, M_pad - M)))

    w2d = (weight.reshape(C_out, Cin) * scale).astype(x.dtype)   # (C_out, Cin)
    b2d = bias.reshape(C_out, 1).astype(jnp.float32)             # (C_out, 1)

    kernel = functools.partial(_from_rgb_kernel, c_out=float(C_out),
                               neg_slope=neg_slope, alpha=alpha)

    itemsize = x.dtype.itemsize
    bytes_accessed = (B * Cin * M_pad * itemsize          # input pixels
                      + C_out * Cin * itemsize            # weight
                      + C_out * 4                         # bias
                      + B * C_out * M_pad * itemsize)     # output (no padding!)
    cost = pl.CostEstimate(
        flops=2 * B * M_pad * Cin * C_out + 6 * B * M_pad * C_out,
        transcendentals=B * M_pad,
        bytes_accessed=bytes_accessed)

    out = pl.pallas_call(
        kernel,
        out_shape=jax.ShapeDtypeStruct((B, C_out, M_pad), x.dtype),
        grid_spec=pltpu.PrefetchScalarGridSpec(
            num_scalar_prefetch=0,
            grid=(B, M_pad // tm),
            in_specs=[
                pl.BlockSpec((1, Cin, tm), lambda b, i: (b, 0, i)),   # pixel tile
                pl.BlockSpec((C_out, Cin), lambda b, i: (0, 0)),      # weight (resident)
                pl.BlockSpec((C_out, 1), lambda b, i: (0, 0)),        # bias (resident)
            ],
            out_specs=pl.BlockSpec((1, C_out, tm), lambda b, i: (b, 0, i)),
        ),
        compiler_params=pltpu.CompilerParams(
            dimension_semantics=("parallel", "parallel")),
        cost_estimate=cost,
    )(x_rows, w2d, b2d)

    # Drop pixel padding; output is already channels-major (NCHW).  No transpose.
    if M_pad != M:
        out = out[:, :, :M]
    return out.reshape(B, C_out, H, W)


if __name__ == "__main__":
    outchannels = 32
    B, H, W = 2, 16, 16

    key = jax.random.PRNGKey(0)
    kx, kw, kb = jax.random.split(key, 3)

    x = jax.random.normal(kx, (B, 3, H, W), jnp.float32)
    # _equalized_conv2d init: weight ~ N(0,1); bias inits to 0 in the module — use a
    # small nonzero value here to exercise the bias path.
    weight = jax.random.normal(kw, (outchannels, 3, 1, 1), jnp.float32)
    bias = 0.1 * jax.random.normal(kb, (outchannels,), jnp.float32)

    y = from_rgb_forward(x, weight, bias)
    jax.block_until_ready(y)

    # Plain-JAX reference mirroring the PyTorch forward exactly.
    scale = math.sqrt(2.0) / math.sqrt(3.0)
    w2d = weight.reshape(outchannels, 3) * scale
    y_ref = jnp.einsum("bchw,oc->bohw", x, w2d) + bias[None, :, None, None]
    y_ref = jnp.where(y_ref >= 0.0, y_ref, 0.2 * y_ref)                 # LeakyReLU(0.2)
    denom = jnp.sqrt(jnp.mean(y_ref * y_ref, axis=1, keepdims=True) + 1e-8)
    y_ref = y_ref / denom                                               # PixelwiseNorm

    assert y.shape == y_ref.shape
    assert jnp.allclose(y, y_ref, atol=1e-4, rtol=1e-4), "mismatch vs reference"

    print("KERNEL_OK")
</pallas_src>

<mosaic_0001>
module attributes {stable_mosaic.version = 11 : i64} {
  func.func @_from_rgb_kernel(%arg0: i32, %arg1: i32, %arg2: memref<1x3x256xf32, #tpu.memory_space<vmem>>, %arg3: memref<32x3xf32, #tpu.memory_space<vmem>>, %arg4: memref<32x1xf32, #tpu.memory_space<vmem>>, %arg5: memref<1x32x256xf32, #tpu.memory_space<vmem>>) attributes {dimension_semantics = [#tpu.dimension_semantics<parallel>, #tpu.dimension_semantics<parallel>], iteration_bounds = array<i64: 2, 1>, scalar_prefetch = 0 : i64, scratch_operands = 0 : i64, tpu.core_type = #tpu.core_type<tc>, window_params = [{transform_indices = @transform_0, window_bounds = array<i64: 1, 3, 256>}, {pipeline_mode = #tpu.pipeline_mode<synchronous>, transform_indices = @transform_1, window_bounds = array<i64: 32, 3>}, {pipeline_mode = #tpu.pipeline_mode<synchronous>, transform_indices = @transform_2, window_bounds = array<i64: 32, 1>}, {transform_indices = @transform_3, window_bounds = array<i64: 1, 32, 256>}]} {
    %c0 = arith.constant 0 : index
    %c0_0 = arith.constant 0 : index
    %c0_1 = arith.constant 0 : index
    %0 = vector.load %arg2[%c0, %c0_0, %c0_1] : memref<1x3x256xf32, #tpu.memory_space<vmem>>, vector<1x3x256xf32>
    %1 = vector.shape_cast %0 : vector<1x3x256xf32> to vector<3x256xf32>
    %c0_2 = arith.constant 0 : index
    %c0_3 = arith.constant 0 : index
    %2 = vector.load %arg3[%c0_2, %c0_3] : memref<32x3xf32, #tpu.memory_space<vmem>>, vector<32x3xf32>
    %cst = arith.constant dense<0.000000e+00> : vector<32x256xf32>
    %3 = tpu.matmul %2, %1, %cst {dimension_numbers = #tpu.dot_dimension_numbers<[1], [0], [0], [1], [0, 0, 1, 1], [], []>} : vector<32x3xf32>, vector<3x256xf32>, vector<32x256xf32> -> vector<32x256xf32>
    %c0_4 = arith.constant 0 : index
    %c0_5 = arith.constant 0 : index
    %4 = vector.load %arg4[%c0_4, %c0_5] : memref<32x1xf32, #tpu.memory_space<vmem>>, vector<32x1xf32>
    %5 = vector.broadcast %4 : vector<32x1xf32> to vector<32x256xf32>
    %6 = arith.addf %3, %5 : vector<32x256xf32>
    %cst_6 = arith.constant 2.000000e-01 : f32
    %7 = vector.broadcast %cst_6 : f32 to vector<32x256xf32>
    %8 = arith.mulf %7, %6 : vector<32x256xf32>
    %9 = arith.maximumf %6, %8 : vector<32x256xf32>
    %10 = arith.mulf %9, %9 : vector<32x256xf32>
    %cst_7 = arith.constant dense<0.000000e+00> : vector<256xf32>
    %11 = vector.multi_reduction <add>, %10, %cst_7 [0] : vector<32x256xf32> to vector<256xf32>
    %12 = vector.shape_cast %11 : vector<256xf32> to vector<1x256xf32>
    %cst_8 = arith.constant 3.125000e-02 : f32
    %13 = vector.broadcast %cst_8 : f32 to vector<1x256xf32>
    %14 = arith.mulf %12, %13 : vector<1x256xf32>
    %cst_9 = arith.constant 9.99999993E-9 : f32
    %15 = vector.broadcast %cst_9 : f32 to vector<1x256xf32>
    %16 = arith.addf %14, %15 : vector<1x256xf32>
    %17 = math.rsqrt %16 : vector<1x256xf32>
    %18 = vector.broadcast %17 : vector<1x256xf32> to vector<32x256xf32>
    %19 = arith.mulf %9, %18 : vector<32x256xf32>
    %c0_10 = arith.constant 0 : index
    %c0_11 = arith.constant 0 : index
    %c0_12 = arith.constant 0 : index
    %20 = vector.load %arg5[%c0_10, %c0_11, %c0_12] : memref<1x32x256xf32, #tpu.memory_space<vmem>>, vector<1x32x256xf32>
    %21 = vector.shape_cast %20 : vector<1x32x256xf32> to vector<32x256xf32>
    %22 = vector.shape_cast %19 : vector<32x256xf32> to vector<1x32x256xf32>
    tpu.vector_store %arg5[%c0_10, %c0_11, %c0_12], %22 {strides = array<i32>} : memref<1x32x256xf32, #tpu.memory_space<vmem>>, vector<1x32x256xf32>,
    return
  }
  func.func @transform_0(%arg0: i32, %arg1: i32) -> (i32, i32, i32) {
    %c0_i32 = arith.constant 0 : i32
    %c0_i32_0 = arith.constant 0 : i32
    return %arg0, %c0_i32, %arg1 : i32, i32, i32
  }
  func.func @transform_1(%arg0: i32, %arg1: i32) -> (i32, i32) {
    %c0_i32 = arith.constant 0 : i32
    %c0_i32_0 = arith.constant 0 : i32
    %c0_i32_1 = arith.constant 0 : i32
    return %c0_i32, %c0_i32_0 : i32, i32
  }
  func.func @transform_2(%arg0: i32, %arg1: i32) -> (i32, i32) {
    %c0_i32 = arith.constant 0 : i32
    %c0_i32_0 = arith.constant 0 : i32
    %c0_i32_1 = arith.constant 0 : i32
    return %c0_i32, %c0_i32_0 : i32, i32
  }
  func.func @transform_3(%arg0: i32, %arg1: i32) -> (i32, i32, i32) {
    %c0_i32 = arith.constant 0 : i32
    %c0_i32_0 = arith.constant 0 : i32
    return %arg0, %c0_i32, %arg1 : i32, i32, i32
  }
}

</mosaic_0001>

<bundles_post_ra>
// kernel: tpu_custom_call.1
= control target key start
LH: loop header
LB: loop body
LE: loop exit
PB: predicated region body
PF: predicated region fallthrough
CT: control target
= control target key end

     0   :  { %8 = vsyncpa [#allocation3], 0  ;;  %s830_s0 = inlined_call_operand.vmem [shape: f32[2,3,256], index: 0, kind: input, shape index: {}]   ;;  %s831_s1 = inlined_call_operand.vmem [shape: f32[32,3], index: 1, kind: input, shape index: {}]   ;;  %s832_s2 = inlined_call_operand.vmem [shape: f32[32,1], index: 2, kind: input, shape index: {}]   ;;  %s833_s3 = inlined_call_operand.hbm [shape: f32[2,32,256], index: 3, kind: output, shape index: {}]  }
   0x1   :  { %10 = vsyncpa [#allocation3 + $0x1], 0  ;;  %s691_s12 = smov 0   ;;  %s693_s13 = smov 0  }
   0x2   :  { %s695_s14 = smov 0   ;;  %s697_s15 = smov 0  }
   0x3   :  { %s699_s16 = smov 0   ;;  %s701_s17 = smov 0  }
   0x4 LB: > { %s497_s18 = sadd.s32 4294967295, %s664_s17   ;;  %s498_s19 = sadd.s32 4294967294, %s664_s17   ;;  %s664_s17 = sphi %s701_s17, %s16_s17   ;;  %s660_s16 = sphi %s699_s16, %s840_s16   ;;  %s656_s15 = sphi %s697_s15, %s839_s15   ;;  %s652_s14 = sphi %s695_s14, %s838_s14   ;;  %s648_s13 = sphi %s693_s13, %s837_s13   ;;  %s644_s12 = sphi %s691_s12, %s836_s12  }
   0x5   : > { %s28_s20 = sadd.s32 1, %s660_s16  ;;  %s107_s21 = sadd.s32 1, %s652_s14 }
   0x6   : > { %p30_p0 = scmp.ge.s32.totalorder %s28_s20, 2  ;;  %p117_p1 = scmp.ne.s32.totalorder %s652_s14, %s648_s13 }
   0x7   : > { %p118_p2 = scmp.eq.s32.totalorder %s497_s18, 1  ;;  %p123_p3 = scmp.ne.s32.totalorder %s648_s13, %s644_s12 }
   0x8   : > { %s842_s20 = smov (%p30_p0, %s28_s20), 0  ;;  %p124_p5 = scmp.eq.s32.totalorder %s498_s19, 1 }
   0x9   : > { %p731_p4 = por %p118_p2, %p117_p1  ;;  %s102_s23 = ssub.s32 %s660_s16, %s842_s20 }
   0xa   : > { %p501_p6 = scmp.ge.s32.totalorder %s664_s17, 1  ;;  %p105_p7 = scmp.eq.s32.totalorder %s102_s23, 0 }
   0xb   : > { %p738_p8 = por %p124_p5, %p123_p3  ;;  %p161_p9 = scmp.lt.s32.totalorder %s664_s17, 3 }
   0xc   : > { %s744_s25 = scalar_select %p105_p7, %s652_s14, %s107_s21  }
   0xd   : > { %p162_p10 = pnand %p501_p6, %p161_p9 }
   0xe   : > { %p190_p11 = scmp.lt.s32.totalorder (!%p162_p10), %s656_s15, 1  ;;  %v666_v0 = vmov (!%p162_p10), 0.0   ;;  %v205_v1 = vld [vmem:[%s832_s2] sm:$0xff] (!%p162_p10)  ;;  %v667_v2 = vmov (!%p162_p10), 0   ;;  %v207_v3 = vld [vmem:[%s832_s2 + $0x10] sm:$0xff] (!%p162_p10)  ;;  %v206_v4 = vld [vmem:[%s832_s2 + $0x8] sm:$0xff] (!%p162_p10) }
   0xf   : > { %165 = sbr.rel (%p162_p10) target bundleno = 308 (0x134), region = 32  ;;  %313 = vmatprep.mubr.f32.mxu0 (!%p162_p10), %v666_v0  ;;  %325 = vmatprep.mubr.f32.mxu1 (!%p162_p10), %v666_v0  ;;  %v208_v5 = vld [vmem:[%s832_s2 + $0x18] sm:$0xff] (!%p162_p10)  ;;  %vm244_vm0 = vcmask (!%p162_p10), 1042432   ;;  %v201_v8 = vld [vmem:[%s831_s1] sm:$0xff] (!%p162_p10)  ;;  %vm231_vm1 = vcmask (!%p162_p10), 23552   ;;  %v203_v9 = vld [vmem:[%s831_s1 + $0x10] sm:$0xff] (!%p162_p10) }
  0x10   : > { %579 = vset.pattern.permute.xlu0 (!%p162_p10), %v667_v2  ;;  %580 = vset.pattern.permute.xlu1 (!%p162_p10), %v667_v2  ;;  %v202_v10 = vld [vmem:[%s831_s1 + $0x8] sm:$0xff] (!%p162_p10)  ;;  %v204_v11 = vld [vmem:[%s831_s1 + $0x18] sm:$0xff] (!%p162_p10)  ;;  %s186_s30 = sand.u32 (!%p162_p10), 1, %s648_s13   ;;  %s517_s5 = sshll.u32 (!%p162_p10), %s656_s15, 10 }
  0x11   : > { %211 = vperm.xlu0 (!%p162_p10), %579, %v205_v1   ;;  %221 = vperm.xlu1 (!%p162_p10), %580, %v207_v3   ;;  %s780_s10 = scalar_lea.hbm (!%p162_p10), %s833_s3, %s517_s5  ;;  %s668_s18 = smov (!%p162_p10), [#allocation2]  }
  0x12   : > { %s590_s19 = sshll.u32 (!%p162_p10), %s668_s18, 4  ;;  %s591_s19 = int_to_ptr.vmem [resolvable:$false] %s590_s19 }
  0x13   : > { %s592_s21 = scalar_lea.vmem (!%p162_p10), %s591_s19, 2048 }
  0x15   : > { %216 = vperm.xlu0 (!%p162_p10), %579, %v206_v4   ;;  %226 = vperm.xlu1 (!%p162_p10), %580, %v208_v5  }
  0x16   : > { %s191_s28 = scalar_select %p190_p11, %s656_s15, 1 }
  0x17   : > { %s784_s15 = scalar_lea.sflag [#allocation3], %s186_s30 }
  0x18   : > { %s516_s4 = sshll.u32 %s191_s28, 3 }
  0x19   : > { %s197_s11 = scalar_lea.vmem %s830_s0, %s516_s4  ;;  %s502_s4 = sshll.u32 %s186_s30, 6 }
  0x1a   : > { %v200_v6 = vld [vmem:[%s197_s11] sm:$0x77]  ;;  %s188_s6 = scalar_lea.vmem [#allocation2], %s502_s4 }
  0x1b   : > { %v230_v7 = vcombine.high %v200_v6, %v200_v6  ;;  %s418_s7 = sshll.u32 %s188_s6, 4  ;;  %s782_s7 = int_to_ptr.vmem [resolvable:$true] %s418_s7 }
  0x1c   : > { %s586_s11 = scalar_lea.vmem %s782_s7, 1024  ;;  %p593_p1 = scmp.lt.s32.totalorder %s782_s7, %s591_s19 }
  0x1d   : > { %505 = vmatprep.subr.msk.mxu0 %vm244_vm0, %v230_v7  ;;  %518 = vmatprep.subr.msk.mxu1 %vm244_vm0, %v230_v7  ;;  %p587_p12 = scmp.ne.s32.totalorder %s782_s7, %s586_s11  ;;  %p594_p2 = scmp.lt.s32.totalorder %s592_s21, %s586_s11 }
  0x1e   : > { %506 = vmatpush1.msk.msra.mxu0 %vm244_vm0, %v200_v6  ;;  %519 = vmatpush1.msk.msra.mxu1 %vm244_vm0, %v200_v6 }
  0x1f   : > { %507 = vmatmul.mubr.msk.f32.vlgmr.msra.gmra.mrb[0].mxu0 %vm231_vm1, %v201_v8  ;;  %509 = vmatmul.mubr.msk.f32.vlgmr.msra.gmra.mrb[0].mxu1 %vm231_vm1, %v203_v9  ;;  %p588_p13 = pnand %p587_p12, %p731_p4  ;;  %p595_p3 = por %p594_p2, %p593_p1 }
  0x20   : > { %319 = vmatprep.mubr.f32.mxu0 %v666_v0  ;;  %331 = vmatprep.mubr.f32.mxu1 %v666_v0 }
  0x21   : > { %p589_p0 = pneg %p588_p13 }
  0x23   : > { %508 = vmatmul.mubr.msk.f32.gmra.mrb[2].mxu0 %vm231_vm1, %v202_v10  ;;  %510 = vmatmul.mubr.msk.f32.gmra.mrb[2].mxu1 %vm231_vm1, %v204_v11  ;;  %p596_p5 = pnand %p595_p3, %p589_p0 }
  0x90   : > { %v222_v12 = vpop.permute.xlu1 %221  ;;  %v212_v13 = vpop.permute.xlu0 %211 }
  0x94   : > { %v227_v22 = vpop.permute.xlu1 %226  ;;  %v217_v24 = vpop.permute.xlu0 %216 }
  0xf2   : > { %v315_v14 = vpop.f32.mrb[0].mxu0  ;;  %v327_v15 = vpop.f32.mrb[0].mxu1 }
  0xf3   : > { %v316_v16 = vadd.f32 %v315_v14, %v212_v13  ;;  %v317_v17 = vpop.f32.mrb[1].mxu0  ;;  %v328_v18 = vadd.f32 %v327_v15, %v222_v12  ;;  %v329_v19 = vpop.f32.mrb[1].mxu1 }
  0xf4   : > { %v318_v20 = vadd.f32 %v317_v17, %v212_v13  ;;  %v330_v21 = vadd.f32 %v329_v19, %v222_v12 }
  0xf5   : > { %v338_v23 = vmul.f32 0.2, %v316_v16  ;;  %v342_v28 = vmul.f32 0.2, %v328_v18 }
  0xf6   : > { %v339_v25 = vmul.f32 0.2, %v318_v20  ;;  %v321_v26 = vpop.f32.mrb[2].mxu0  ;;  %v333_v27 = vpop.f32.mrb[2].mxu1  ;;  %v343_v33 = vmul.f32 0.2, %v330_v21 }
  0xf7   : > { %v322_v29 = vadd.f32 %v321_v26, %v217_v24  ;;  %v334_v30 = vadd.f32 %v333_v27, %v227_v22  ;;  %v323_v31 = vpop.f32.mrb[3].mxu0  ;;  %v335_v32 = vpop.f32.mrb[3].mxu1  ;;  %v346_v36 = vmax.f32 %v316_v16, %v338_v23  ;;  %v350_v42 = vmax.f32 %v328_v18, %v342_v28 }
  0xf8   : > { %v324_v34 = vadd.f32 %v323_v31, %v217_v24  ;;  %v336_v35 = vadd.f32 %v335_v32, %v227_v22  ;;  %v347_v39 = vmax.f32 %v318_v20, %v339_v25  ;;  %v351_v44 = vmax.f32 %v330_v21, %v343_v33 }
  0xf9   : > { %v340_v37 = vmul.f32 0.2, %v322_v29  ;;  %v344_v38 = vmul.f32 0.2, %v334_v30  ;;  %v354_v46 = vmul.f32 %v346_v36, %v346_v36  ;;  %v358_v52 = vmul.f32 %v350_v42, %v350_v42 }
  0xfa   : > { %v341_v40 = vmul.f32 0.2, %v324_v34  ;;  %v345_v41 = vmul.f32 0.2, %v336_v35  ;;  %v355_v49 = vmul.f32 %v347_v39, %v347_v39  ;;  %v359_v54 = vmul.f32 %v351_v44, %v351_v44 }
  0xfb   : > { %v348_v43 = vmax.f32 %v322_v29, %v340_v37  ;;  %v352_v48 = vmax.f32 %v334_v30, %v344_v38 }
  0xfc   : > { %v349_v45 = vmax.f32 %v324_v34, %v341_v40  ;;  %v353_v51 = vmax.f32 %v336_v35, %v345_v41 }
  0xfd   : > { %v356_v47 = vmul.f32 %v348_v43, %v348_v43  ;;  %v360_v56 = vmul.f32 %v352_v48, %v352_v48 }
  0xfe   : > { %v357_v50 = vmul.f32 %v349_v45, %v349_v45  ;;  %v361_v58 = vmul.f32 %v353_v51, %v353_v51 }
  0xff   : > { %v362_v53 = vadd.f32 %v356_v47, %v354_v46 }
 0x100   : > { %v371_v55 = vadd.f32 %v357_v50, %v355_v49 }
 0x101   : > { %v363_v57 = vadd.f32 %v362_v53, %v358_v52 }
 0x102   : > { %v372_v59 = vadd.f32 %v371_v55, %v359_v54 }
 0x103   : > { %v364_v60 = vadd.f32 %v363_v57, %v360_v56 }
 0x104   : > { %v373_v61 = vadd.f32 %v372_v59, %v361_v58 }
 0x105   : > { %v365_v62 = vrot.slane %v364_v60, 4 }
 0x106   : > { %v374_v63 = vrot.slane %v373_v61, 4 }
 0x107   : > { %v366_v0 = vadd.f32 %v365_v62, %v364_v60 }
 0x108   : > { %v375_v1 = vadd.f32 %v374_v63, %v373_v61 }
 0x109   : > { %v367_v2 = vrot.slane %v366_v0, 2 }
 0x10a   : > { %v376_v3 = vrot.slane %v375_v1, 2 }
 0x10b   : > { %v368_v4 = vadd.f32 %v367_v2, %v366_v0 }
 0x10c   : > { %v377_v5 = vadd.f32 %v376_v3, %v375_v1 }
 0x10d   : > { %v369_v6 = vrot.slane %v368_v4, 1 }
 0x10e   : > { %v378_v7 = vrot.slane %v377_v5, 1 }
 0x10f   : > { %v370_v8 = vadd.f32 %v369_v6, %v368_v4 }
 0x110   : > { %v379_v9 = vadd.f32 %v378_v7, %v377_v5 }
 0x111   : > { %v380_v10 = vmul.f32 0.03125, %v370_v8 }
 0x112   : > { %v381_v11 = vmul.f32 0.03125, %v379_v9 }
 0x113   : > { %v382_v12 = vadd.f32 1e-08, %v380_v10 }
 0x114   : > { %v383_v13 = vadd.f32 1e-08, %v381_v11 }
 0x115   : > { %582 = vrsqrt.f32 %v382_v12 }
 0x116   : > { %584 = vrsqrt.f32 %v383_v13 }
 0x11f   : > { %v583_v14 = vpop.eup %582 }
 0x120   : > { %v585_v15 = vpop.eup %584  ;;  %v392_v16 = vmul.f32 %v583_v14, %v352_v48  ;;  %v386_v17 = vmul.f32 %v583_v14, %v346_v36  ;;  %v388_v18 = vmul.f32 %v583_v14, %v348_v43  ;;  %v390_v19 = vmul.f32 %v583_v14, %v350_v42 }
 0x121   : > { %v393_v20 = vmul.f32 %v585_v15, %v353_v51  ;;  %v387_v21 = vmul.f32 %v585_v15, %v347_v39  ;;  %v389_v22 = vmul.f32 %v585_v15, %v349_v45  ;;  %v391_v23 = vmul.f32 %v585_v15, %v351_v44 }
 0x122   : > { %400 = vst [vmem:[%s188_s6 + $0x30] sm:$0xff] %v392_v16  ;;  %394 = vst [vmem:[%s188_s6] sm:$0xff] %v386_v17 }
 0x123   : > { %396 = vst [vmem:[%s188_s6 + $0x10] sm:$0xff] %v388_v18  ;;  %398 = vst [vmem:[%s188_s6 + $0x20] sm:$0xff] %v390_v19 }
 0x124   : > { %401 = vst [vmem:[%s188_s6 + $0x38] sm:$0xff] %v393_v20  ;;  %395 = vst [vmem:[%s188_s6 + $0x8] sm:$0xff] %v387_v21 }
 0x125   : > { %397 = vst [vmem:[%s188_s6 + $0x18] sm:$0xff] %v389_v22  ;;  %399 = vst [vmem:[%s188_s6 + $0x28] sm:$0xff] %v391_v23 }
 0x126   : > { %599 = shalt.err (!%p596_p5)
}
 0x127   : > { %s600_s23 = scalar_lea.hbm %s780_s10, 1024  ;;  %s604_s28 = scalar_lea.hbm %s833_s3, 2048 }
 0x128   : > { %p601_p6 = scmp.ne.s32.totalorder %s780_s10, %s600_s23  ;;  %p605_p10 = scmp.lt.u32.totalorder %s780_s10, %s833_s3 }
 0x129   : > { %p606_p11 = scmp.lt.u32.totalorder %s604_s28, %s600_s23  ;;  %p608_p13 = scmp.lt.u32.totalorder %s600_s23, %s780_s10 }
 0x12a   : > { %p602_p7 = pnand %p601_p6, %p731_p4 }
 0x12b   : > { %p607_p12 = por %p606_p11, %p605_p10 }
 0x12c   : > { %p603_p9 = pneg %p602_p7 }
 0x12d   : > { %p609_p0 = por %p608_p13, %p607_p12 }
 0x12f   : > { %p610_p1 = pnand %p609_p0, %p603_p9 }
 0x131   : > { %613 = shalt.err (!%p610_p1)
}
 0x132   : > { %s669_s4 = smov 256   ;;  %s670_s5 = smov 16  }
 0x133   : > { %520 = dma.vmem_to_hbm [thread:$0]  (%p731_p4), %s782_s7, 1024, %s780_s10, %s784_s15, %s669_s4, %s669_s4, %s670_s5  }
 0x134 PF: > { %p526_p2 = scmp.ge.s32.totalorder %s664_s17, 2  ;;  %s433_s6 = sand.u32 1, %s644_s12  }
 0x135   : > { %s434_s8 = scalar_lea.sflag [#allocation3], %s433_s6 }
 0x136   : > { %p523_p3 = pnand %p526_p2, %p738_p8 }
 0x138   : > { %639 = dma.done.wait (!%p523_p3), %s434_s8, 1024  }
 0x139   : > { %641 = vsyncadd (!%p523_p3), %s434_s8, 4294966272  ;;  %s16_s17 = sadd.s32 1, %s664_s17   ;;  %s836_s12 = smov %s648_s13 }
 0x13a   : > { %p13_p5 = scmp.ge.s32.totalorder %s16_s17, 4   ;;  %s837_s13 = smov %s652_s14 }
 0x13b   : > { %s838_s14 = smov %s744_s25  ;;  %s839_s15 = smov %s660_s16 }
 0x13c   : > { %s840_s16 = smov %s842_s20  ;;  %15 = sbr.rel (!%p13_p5) target bundleno = 4 (0x4), region = 67 }
 0x143   :  { %439 = vsyncpa [#allocation3], 1 }
 0x144   :  { %441 = vsyncpa [#allocation3 + $0x1], 1 }

</bundles_post_ra>
